<compile_context>
chip_gen: v7x
topology: tpu7x:2x2x1
jax: 0.10.0
libtpu: 0.0.40
codegen_flags: <defaults>
</compile_context>

<pallas_src>
import math

import jax
import jax.numpy as jnp
from jax.experimental import pallas as pl
from jax.experimental.pallas import tpu as pltpu


_VMEM_LIMIT_BYTES = 32 * 1024 * 1024   # scoped-VMEM limit, safe on v5e/v6e/v7x
_VMEM_TILE_BUDGET = 24 * 1024 * 1024   # target working set (headroom under the limit)


def _round_up(x, m):
    return ((x + m - 1) // m) * m


def _largest_divisor_tile(n, candidates):
    for c in candidates:
        if n % c == 0:
            return c
    return n  # unreachable when n is a multiple of the smallest candidate


# ---------------------------------------------------------------------------
# Fused kernels: out[b, i-tile] = sum_k adj[b, i-tile, k-tile] @ (x[b, k-tile] @ W)
# ---------------------------------------------------------------------------
def _make_single_k_kernel(has_bias, compute_dtype):
    """Whole contraction in one k tile: no accumulator scratch, no pl.when."""

    def _tile(adj_ref, x_ref, w_ref):
        # x/adj are streamed in their original dtype (f32) and cast in VMEM;
        # W is already bf16 and resident (constant index_map).
        sup = jnp.dot(x_ref[...].astype(compute_dtype), w_ref[...],
                      preferred_element_type=jnp.float32).astype(compute_dtype)
        return jnp.dot(adj_ref[...].astype(compute_dtype), sup,
                       preferred_element_type=jnp.float32)

    if has_bias:
        def kernel(adj_ref, x_ref, w_ref, bias_ref, out_ref):
            out_ref[...] = (_tile(adj_ref, x_ref, w_ref)
                            + bias_ref[...]).astype(out_ref.dtype)
    else:
        def kernel(adj_ref, x_ref, w_ref, out_ref):
            out_ref[...] = _tile(adj_ref, x_ref, w_ref).astype(out_ref.dtype)
    return kernel


def _make_multi_k_kernel(has_bias, compute_dtype):
    """Contraction tiled over k with an f32 VMEM accumulator."""

    def _accumulate(adj_ref, x_ref, w_ref, acc_ref):
        @pl.when(pl.program_id(2) == 0)
        def _init():
            acc_ref[...] = jnp.zeros_like(acc_ref)

        sup = jnp.dot(x_ref[...].astype(compute_dtype), w_ref[...],
                      preferred_element_type=jnp.float32).astype(compute_dtype)
        acc_ref[...] += jnp.dot(adj_ref[...].astype(compute_dtype), sup,
                                preferred_element_type=jnp.float32)

    if has_bias:
        def kernel(adj_ref, x_ref, w_ref, bias_ref, out_ref, acc_ref):
            _accumulate(adj_ref, x_ref, w_ref, acc_ref)

            @pl.when(pl.program_id(2) == pl.num_programs(2) - 1)
            def _finalize():
                out_ref[...] = (acc_ref[...] + bias_ref[...]).astype(out_ref.dtype)
    else:
        def kernel(adj_ref, x_ref, w_ref, out_ref, acc_ref):
            _accumulate(adj_ref, x_ref, w_ref, acc_ref)

            @pl.when(pl.program_id(2) == pl.num_programs(2) - 1)
            def _finalize():
                out_ref[...] = acc_ref[...].astype(out_ref.dtype)
    return kernel


def graph_convolution(x, adj, weight, bias=None, *, compute_dtype=jnp.bfloat16):
    """Pallas GCN forward: adj @ (x @ weight) (+ bias).

    x:      [B, N, Fin]
    adj:    [B, N, N]
    weight: [Fin, Fout]
    bias:   [1, 1, Fout] or None
    returns [B, N, Fout] in x.dtype
    """
    B, N, Fin = x.shape
    assert weight.shape[0] == Fin
    Fout = weight.shape[1]
    assert adj.shape == (B, N, N)
    out_dtype = x.dtype
    has_bias = bias is not None

    # ---- padding / tile selection -------------------------------------------
    Fpad = _round_up(Fout, 128)   # lane-dense output columns
    Npad = _round_up(N, 128)      # lane-dense adj tiles, full-width MXU contraction

    TM = _largest_divisor_tile(Npad, (512, 256, 128))
    TK = _largest_divisor_tile(Npad, (1024, 512, 256, 128))

    adj_bytes = jnp.dtype(adj.dtype).itemsize
    x_bytes = jnp.dtype(x.dtype).itemsize
    out_bytes = jnp.dtype(out_dtype).itemsize
    cdt_bytes = jnp.dtype(compute_dtype).itemsize

    def _vmem_estimate(tm, tk):
        return (tm * tk * adj_bytes * 2           # adj tile (original dtype), dbl-buffered
                + tk * Fin * x_bytes * 2          # x tile, dbl-buffered
                + Fin * Fpad * cdt_bytes * 2      # resident weight (2 buffers allocated)
                + Fpad * 4 * 2                    # bias
                + tm * Fpad * 4                   # f32 accumulator scratch
                + tm * Fpad * out_bytes * 2)      # output tile, dbl-buffered

    # Shrink tiles only if the working set would blow the (v7x-safe) budget.
    while _vmem_estimate(TM, TK) > _VMEM_TILE_BUDGET and TK > 128:
        TK //= 2
    while _vmem_estimate(TM, TK) > _VMEM_TILE_BUDGET and TM > 128:
        TM //= 2

    # Megacore: make sure both TensorCores get parallel work (B==1, single row tile).
    if B * (Npad // TM) < 2 and TM >= 256:
        TM //= 2

    # Pad only when N isn't tile-aligned; adj/x stay in their ORIGINAL dtype so the
    # dominant adj traffic is read once in f32 and cast in VMEM (no bf16 HBM copy).
    if Npad != N:
        adj_in = jnp.pad(adj, ((0, 0), (0, Npad - N), (0, Npad - N)))
        x_in = jnp.pad(x, ((0, 0), (0, Npad - N), (0, 0)))
    else:
        adj_in, x_in = adj, x
    wc = jnp.pad(weight, ((0, 0), (0, Fpad - Fout))).astype(compute_dtype)  # small

    n_k = Npad // TK
    multi_k = n_k > 1

    # ---- block specs / grid ---------------------------------------------------
    if multi_k:
        grid = (B, Npad // TM, n_k)
        adj_spec = pl.BlockSpec((None, TM, TK), lambda b, i, k: (b, i, k))
        x_spec = pl.BlockSpec((None, TK, Fin), lambda b, i, k: (b, k, 0))
        w_spec = pl.BlockSpec((Fin, Fpad), lambda b, i, k: (0, 0))      # resident
        bias_spec = pl.BlockSpec((1, Fpad), lambda b, i, k: (0, 0))     # resident
        out_spec = pl.BlockSpec((None, TM, Fpad), lambda b, i, k: (b, i, 0))
        scratch = [pltpu.VMEM((TM, Fpad), jnp.float32)]
        dims = ("parallel", "parallel", "arbitrary")
        kernel = _make_multi_k_kernel(has_bias, compute_dtype)
    else:
        grid = (B, Npad // TM)
        adj_spec = pl.BlockSpec((None, TM, TK), lambda b, i: (b, i, 0))
        x_spec = pl.BlockSpec((None, TK, Fin), lambda b, i: (b, 0, 0))
        w_spec = pl.BlockSpec((Fin, Fpad), lambda b, i: (0, 0))
        bias_spec = pl.BlockSpec((1, Fpad), lambda b, i: (0, 0))
        out_spec = pl.BlockSpec((None, TM, Fpad), lambda b, i: (b, i, 0))
        scratch = []
        dims = ("parallel", "parallel")
        kernel = _make_single_k_kernel(has_bias, compute_dtype)

    in_specs = [adj_spec, x_spec, w_spec]
    inputs = [adj_in, x_in, wc]
    if has_bias:
        bias2d = jnp.pad(jnp.reshape(bias, (1, Fout)).astype(jnp.float32),
                         ((0, 0), (0, Fpad - Fout)))
        in_specs.append(bias_spec)
        inputs.append(bias2d)

    cost = pl.CostEstimate(
        flops=int(2 * B * Npad * Npad * Fpad
                  + 2 * B * Npad * Fin * Fpad * (Npad // TM)),
        transcendentals=0,
        bytes_accessed=int(
            adj_bytes * B * Npad * Npad                       # adj read once
            + x_bytes * B * Npad * Fin * (Npad // TM)         # x re-read per row tile
            + cdt_bytes * Fin * Fpad                          # weight
            + out_bytes * B * Npad * Fpad                     # output
            + (4 * Fpad if has_bias else 0)),
    )

    out_p = pl.pallas_call(
        kernel,
        out_shape=jax.ShapeDtypeStruct((B, Npad, Fpad), out_dtype),
        grid_spec=pltpu.PrefetchScalarGridSpec(
            num_scalar_prefetch=0,
            grid=grid,
            in_specs=in_specs,
            out_specs=out_spec,
            scratch_shapes=scratch,
        ),
        compiler_params=pltpu.CompilerParams(
            dimension_semantics=dims,
            vmem_limit_bytes=_VMEM_LIMIT_BYTES,
        ),
        cost_estimate=cost,
    )(*inputs)

    if Npad != N or Fpad != Fout:
        out_p = out_p[:, :N, :Fout]
    return out_p


if __name__ == "__main__":
    # Small shapes consistent with the module: batch=2, nodes(seq)=16,
    # in_features=32, out_features=64.
    B, N, Fin, Fout = 2, 16, 32, 64
    key = jax.random.PRNGKey(0)
    kx, kadj, kw, kb = jax.random.split(key, 4)

    x = jax.random.normal(kx, (B, N, Fin), dtype=jnp.float32)
    adj = jax.random.uniform(kadj, (B, N, N), dtype=jnp.float32)

    # Parameter init mirroring reset_parameters(): U(-stdv, stdv), stdv = 1/sqrt(Fout)
    stdv = 1.0 / math.sqrt(Fout)
    weight = jax.random.uniform(kw, (Fin, Fout), minval=-stdv, maxval=stdv,
                                dtype=jnp.float32)
    bias = jax.random.uniform(kb, (1, 1, Fout), minval=-stdv, maxval=stdv,
                              dtype=jnp.float32)

    out = jax.block_until_ready(graph_convolution(x, adj, weight, bias))
    assert out.shape == (B, N, Fout)

    # bf16-faithful reference (same compute dtype as the kernel, f32 accumulation)
    xw = jnp.matmul(x.astype(jnp.bfloat16), weight.astype(jnp.bfloat16),
                    preferred_element_type=jnp.float32).astype(jnp.bfloat16)
    ref = jnp.matmul(adj.astype(jnp.bfloat16), xw,
                     preferred_element_type=jnp.float32) + bias
    assert jnp.allclose(out, ref, atol=1e-2, rtol=1e-2), "mismatch vs bf16 reference"

    # loose sanity check against the pure-f32 math of the original torch module
    ref_f32 = jnp.matmul(adj, jnp.matmul(x, weight)) + bias
    assert jnp.allclose(out, ref_f32, atol=1e-1, rtol=1e-1), "mismatch vs f32 reference"

    # bias=None path (module default is bias=False)
    out_nb = jax.block_until_ready(graph_convolution(x, adj, weight, None))
    ref_nb = jnp.matmul(adj.astype(jnp.bfloat16), xw, preferred_element_type=jnp.float32)
    assert jnp.allclose(out_nb, ref_nb, atol=1e-2, rtol=1e-2), "mismatch (no-bias path)"

    # Exercise the multi-k accumulator path + N/Fout padding path (Npad=384, 3 k-tiles).
    B2, N2, Fin2, Fout2 = 1, 300, 24, 72
    k2 = jax.random.split(jax.random.PRNGKey(1), 4)
    x2 = jax.random.normal(k2[0], (B2, N2, Fin2), dtype=jnp.float32)
    adj2 = jax.random.uniform(k2[1], (B2, N2, N2), dtype=jnp.float32)
    w2 = jax.random.uniform(k2[2], (Fin2, Fout2), minval=-0.1, maxval=0.1,
                            dtype=jnp.float32)
    b2 = jax.random.uniform(k2[3], (1, 1, Fout2), minval=-0.1, maxval=0.1,
                            dtype=jnp.float32)
    out2 = jax.block_until_ready(graph_convolution(x2, adj2, w2, b2))
    assert out2.shape == (B2, N2, Fout2)
    xw2 = jnp.matmul(x2.astype(jnp.bfloat16), w2.astype(jnp.bfloat16),
                     preferred_element_type=jnp.float32).astype(jnp.bfloat16)
    ref2 = jnp.matmul(adj2.astype(jnp.bfloat16), xw2,
                      preferred_element_type=jnp.float32) + b2
    assert jnp.allclose(out2, ref2, atol=5e-2, rtol=5e-2), "mismatch (multi-k path)"

    print("KERNEL_OK")
</pallas_src>

<mosaic_0001>
module attributes {stable_mosaic.version = 11 : i64} {
  func.func @kernel(%arg0: i32, %arg1: i32, %arg2: memref<1x128x128xf32, #tpu.memory_space<vmem>>, %arg3: memref<1x128x32xf32, #tpu.memory_space<vmem>>, %arg4: memref<32x128xbf16, #tpu.memory_space<vmem>>, %arg5: memref<1x128xf32, #tpu.memory_space<vmem>>, %arg6: memref<1x128x128xf32, #tpu.memory_space<vmem>>) attributes {dimension_semantics = [#tpu.dimension_semantics<parallel>, #tpu.dimension_semantics<parallel>], iteration_bounds = array<i64: 2, 1>, scalar_prefetch = 0 : i64, scratch_operands = 0 : i64, tpu.core_type = #tpu.core_type<tc>, window_params = [{transform_indices = @transform_0, window_bounds = array<i64: 1, 128, 128>}, {transform_indices = @transform_1, window_bounds = array<i64: 1, 128, 32>}, {pipeline_mode = #tpu.pipeline_mode<synchronous>, transform_indices = @transform_2, window_bounds = array<i64: 32, 128>}, {pipeline_mode = #tpu.pipeline_mode<synchronous>, transform_indices = @transform_3, window_bounds = array<i64: 1, 128>}, {transform_indices = @transform_4, window_bounds = array<i64: 1, 128, 128>}]} {
    %c0 = arith.constant 0 : index
    %c0_0 = arith.constant 0 : index
    %c0_1 = arith.constant 0 : index
    %0 = vector.load %arg3[%c0, %c0_0, %c0_1] : memref<1x128x32xf32, #tpu.memory_space<vmem>>, vector<1x128x32xf32>
    %1 = vector.shape_cast %0 : vector<1x128x32xf32> to vector<128x32xf32>
    %2 = arith.truncf %1 : vector<128x32xf32> to vector<128x32xbf16>
    %c0_2 = arith.constant 0 : index
    %c0_3 = arith.constant 0 : index
    %3 = vector.load %arg4[%c0_2, %c0_3] : memref<32x128xbf16, #tpu.memory_space<vmem>>, vector<32x128xbf16>
    %cst = arith.constant dense<0.000000e+00> : vector<128x128xf32>
    %4 = tpu.matmul %2, %3, %cst {dimension_numbers = #tpu.dot_dimension_numbers<[1], [0], [0], [1], [0, 0, 1, 1], [], []>} : vector<128x32xbf16>, vector<32x128xbf16>, vector<128x128xf32> -> vector<128x128xf32>
    %5 = arith.truncf %4 : vector<128x128xf32> to vector<128x128xbf16>
    %c0_4 = arith.constant 0 : index
    %c0_5 = arith.constant 0 : index
    %c0_6 = arith.constant 0 : index
    %6 = vector.load %arg2[%c0_4, %c0_5, %c0_6] : memref<1x128x128xf32, #tpu.memory_space<vmem>>, vector<1x128x128xf32>
    %7 = vector.shape_cast %6 : vector<1x128x128xf32> to vector<128x128xf32>
    %8 = arith.truncf %7 : vector<128x128xf32> to vector<128x128xbf16>
    %cst_7 = arith.constant dense<0.000000e+00> : vector<128x128xf32>
    %9 = tpu.matmul %8, %5, %cst_7 {dimension_numbers = #tpu.dot_dimension_numbers<[1], [0], [0], [1], [0, 0, 1, 1], [], []>} : vector<128x128xbf16>, vector<128x128xbf16>, vector<128x128xf32> -> vector<128x128xf32>
    %c0_8 = arith.constant 0 : index
    %c0_9 = arith.constant 0 : index
    %10 = vector.load %arg5[%c0_8, %c0_9] : memref<1x128xf32, #tpu.memory_space<vmem>>, vector<1x128xf32>
    %11 = vector.broadcast %10 : vector<1x128xf32> to vector<128x128xf32>
    %12 = arith.addf %9, %11 : vector<128x128xf32>
    %c0_10 = arith.constant 0 : index
    %c0_11 = arith.constant 0 : index
    %c0_12 = arith.constant 0 : index
    %13 = vector.load %arg6[%c0_10, %c0_11, %c0_12] : memref<1x128x128xf32, #tpu.memory_space<vmem>>, vector<1x128x128xf32>
    %14 = vector.shape_cast %13 : vector<1x128x128xf32> to vector<128x128xf32>
    %15 = vector.shape_cast %12 : vector<128x128xf32> to vector<1x128x128xf32>
    tpu.vector_store %arg6[%c0_10, %c0_11, %c0_12], %15 {strides = array<i32>} : memref<1x128x128xf32, #tpu.memory_space<vmem>>, vector<1x128x128xf32>,
    return
  }
  func.func @transform_0(%arg0: i32, %arg1: i32) -> (i32, i32, i32) {
    %c0_i32 = arith.constant 0 : i32
    %c0_i32_0 = arith.constant 0 : i32
    return %arg0, %arg1, %c0_i32 : i32, i32, i32
  }
  func.func @transform_1(%arg0: i32, %arg1: i32) -> (i32, i32, i32) {
    %c0_i32 = arith.constant 0 : i32
    %c0_i32_0 = arith.constant 0 : i32
    %c0_i32_1 = arith.constant 0 : i32
    return %arg0, %c0_i32, %c0_i32_0 : i32, i32, i32
  }
  func.func @transform_2(%arg0: i32, %arg1: i32) -> (i32, i32) {
    %c0_i32 = arith.constant 0 : i32
    %c0_i32_0 = arith.constant 0 : i32
    %c0_i32_1 = arith.constant 0 : i32
    return %c0_i32, %c0_i32_0 : i32, i32
  }
  func.func @transform_3(%arg0: i32, %arg1: i32) -> (i32, i32) {
    %c0_i32 = arith.constant 0 : i32
    %c0_i32_0 = arith.constant 0 : i32
    %c0_i32_1 = arith.constant 0 : i32
    return %c0_i32, %c0_i32_0 : i32, i32
  }
  func.func @transform_4(%arg0: i32, %arg1: i32) -> (i32, i32, i32) {
    %c0_i32 = arith.constant 0 : i32
    %c0_i32_0 = arith.constant 0 : i32
    return %arg0, %arg1, %c0_i32 : i32, i32, i32
  }
}

</mosaic_0001>

<bundles_post_ra>
// kernel: tpu_custom_call.1
= control target key start
LH: loop header
LB: loop body
LE: loop exit
PB: predicated region body
PF: predicated region fallthrough
CT: control target
= control target key end

     0   :  { %9 = vsyncpa [#allocation3], 0  ;;  %s1160_s0 = inlined_call_operand.vmem [shape: f32[2,128,128], index: 0, kind: input, shape index: {}]   ;;  %s1161_s1 = inlined_call_operand.vmem [shape: f32[2,128,32], index: 1, kind: input, shape index: {}]   ;;  %s1162_s2 = inlined_call_operand.vmem [shape: bf16[32,128], index: 2, kind: input, shape index: {}]   ;;  %s1163_s3 = inlined_call_operand.vmem [shape: f32[1,128], index: 3, kind: input, shape index: {}]   ;;  %s1164_s4 = inlined_call_operand.hbm [shape: f32[2,128,128], index: 4, kind: output, shape index: {}]  }
   0x1   :  { %11 = vsyncpa [#allocation3 + $0x1], 0  ;;  %s959_s15 = smov 0   ;;  %s961_s16 = smov 0  }
   0x2   :  { %s963_s17 = smov 0   ;;  %s965_s18 = smov 0  }
   0x3   :  { %s967_s19 = smov 0   ;;  %s969_s20 = smov 0  }
   0x4 LB: > { %s669_s21 = sadd.s32 4294967295, %s929_s20   ;;  %s670_s22 = sadd.s32 4294967294, %s929_s20   ;;  %s929_s20 = sphi %s969_s20, %s17_s20   ;;  %s925_s19 = sphi %s967_s19, %s1171_s19   ;;  %s921_s18 = sphi %s965_s18, %s1170_s18   ;;  %s917_s17 = sphi %s963_s17, %s1169_s17   ;;  %s913_s16 = sphi %s961_s16, %s1168_s16   ;;  %s909_s15 = sphi %s959_s15, %s1167_s15  }
   0x5   : > { %s29_s23 = sadd.s32 1, %s925_s19  ;;  %s134_s24 = sadd.s32 1, %s917_s17 }
   0x6   : > { %p31_p0 = scmp.ge.s32.totalorder %s29_s23, 2  ;;  %p144_p1 = scmp.ne.s32.totalorder %s917_s17, %s913_s16 }
   0x7   : > { %p145_p2 = scmp.eq.s32.totalorder %s669_s21, 1  ;;  %p150_p3 = scmp.ne.s32.totalorder %s913_s16, %s909_s15 }
   0x8   : > { %s1173_s23 = smov (%p31_p0, %s29_s23), 0  ;;  %p151_p5 = scmp.eq.s32.totalorder %s670_s22, 1 }
   0x9   : > { %p999_p4 = por %p145_p2, %p144_p1  ;;  %s129_s26 = ssub.s32 %s925_s19, %s1173_s23 }
   0xa   : > { %p673_p6 = scmp.ge.s32.totalorder %s929_s20, 1  ;;  %p132_p7 = scmp.eq.s32.totalorder %s129_s26, 0 }
   0xb   : > { %p1006_p8 = por %p151_p5, %p150_p3  ;;  %p196_p9 = scmp.lt.s32.totalorder %s929_s20, 3 }
   0xc   : > { %s1012_s28 = scalar_select %p132_p7, %s917_s17, %s134_s24  }
   0xd   : > { %p197_p10 = pnand %p673_p6, %p196_p9 }
   0xe   : > { %v849_v0 = vld [vmem:[%s1162_s2] sm:$0xff] (!%p197_p10)   ;;  %p232_p11 = scmp.lt.s32.totalorder (!%p197_p10), %s921_s18, 1  ;;  %v850_v1 = vld [vmem:[%s1162_s2 + $0x8] sm:$0xff] (!%p197_p10)   ;;  %vm288_vm0 = vcmask (!%p197_p10), 261120   ;;  %s228_s21 = sand.u32 (!%p197_p10), 1, %s913_s16  }
   0xf   : > { %200 = sbr.rel (%p197_p10) target bundleno = 527 (0x20f), region = 36  ;;  %724 = vmatprep.subr.bf16.mxu0 (!%p197_p10), %v849_v0  ;;  %s674_s22 = sshll.u32 (!%p197_p10), %s228_s21, 7 }
  0x10   : > { %725 = vmatpush3.bf16.msra.mxu0 (!%p197_p10), %v849_v0  ;;  %s1085_s29 = scalar_lea.vmem (!%p197_p10), [#allocation2], %s674_s22  ;;  %s697_s30 = sshll.u32 (!%p197_p10), %s921_s18, 11 }
  0x11   : > { %726 = vmatprep.subr.bf16.mxu0 (!%p197_p10), %v850_v1  ;;  %s578_s5 = sshll.u32 (!%p197_p10), %s1085_s29, 4  ;;  %s931_s10 = smov (!%p197_p10), [#allocation2]   ;;  %s1107_s5 = int_to_ptr.vmem [resolvable:$true] %s578_s5 }
  0x12   : > { %s851_s9 = scalar_lea.vmem (!%p197_p10), %s1107_s5, 2048 }
  0x13   : > { %p852_p12 = scmp.ne.s32.totalorder (!%p197_p10), %s1107_s5, %s851_s9 }
  0x14   : > { %727 = vmatpush3.bf16.msra.mxu0 (!%p197_p10), %v850_v1 }
  0x15   : > { %p853_p13 = pnand (!%p197_p10), %p852_p12, %p999_p4 }
  0x16   : > { %s1022_s7 = scalar_select %p232_p11, %s921_s18, 1 }
  0x17   : > { %s1114_s18 = scalar_lea.sflag [#allocation3], %s228_s21  ;;  %p854_p0 = pneg %p853_p13 }
  0x18   : > { %s695_s8 = sshll.u32 %s1022_s7, 7 }
  0x19   : > { %s1030_s11 = scalar_lea.vmem %s1161_s1, %s695_s8  ;;  %s1061_s14 = scalar_lea.vmem %s1160_s0, %s695_s8 }
  0x1a   : > { %v248_v2 = vld [vmem:[%s1030_s11] sm:$0xff]  ;;  %v249_v3 = vld [vmem:[%s1030_s11 + $0x8] sm:$0xff]  ;;  %v250_v4 = vld [vmem:[%s1030_s11 + $0x10] sm:$0xff]  ;;  %s1105_s8 = scalar_lea.hbm %s1164_s4, %s697_s30 }
  0x1b   : > { %v264_v5 = vpack.c.bf16 %v249_v3, %v248_v2  ;;  %v251_v6 = vld [vmem:[%s1030_s11 + $0x18] sm:$0xff]  ;;  %v252_v7 = vld [vmem:[%s1030_s11 + $0x20] sm:$0xff]  ;;  %v253_v8 = vld [vmem:[%s1030_s11 + $0x28] sm:$0xff] }
  0x1c   : > { %v265_v9 = vpack.c.bf16 %v251_v6, %v250_v4  ;;  %v266_v10 = vpack.c.bf16 %v253_v8, %v252_v7  ;;  %v254_v11 = vld [vmem:[%s1030_s11 + $0x30] sm:$0xff]  ;;  %v255_v12 = vld [vmem:[%s1030_s11 + $0x38] sm:$0xff]  ;;  %v256_v13 = vld [vmem:[%s1030_s11 + $0x40] sm:$0xff] }
  0x1d   : > { %728 = vmatprep.mubr.msk.bf16.mxu0 %vm288_vm0, %v264_v5  ;;  %v257_v14 = vld [vmem:[%s1030_s11 + $0x48] sm:$0xff]  ;;  %v267_v15 = vpack.c.bf16 %v255_v12, %v254_v11  ;;  %v258_v17 = vld [vmem:[%s1030_s11 + $0x50] sm:$0xff]  ;;  %v259_v18 = vld [vmem:[%s1030_s11 + $0x58] sm:$0xff] }
  0x1e   : > { %729 = vmatmul.mubr.msk.bf16.vlgmr.msra.gmra.mrb[0].mxu0 %vm288_vm0, %v265_v9  ;;  %v268_v16 = vpack.c.bf16 %v257_v14, %v256_v13  ;;  %v260_v19 = vld [vmem:[%s1030_s11 + $0x60] sm:$0xff]  ;;  %v261_v20 = vld [vmem:[%s1030_s11 + $0x68] sm:$0xff]  ;;  %v269_v21 = vpack.c.bf16 %v259_v18, %v258_v17  ;;  %v262_v23 = vld [vmem:[%s1030_s11 + $0x70] sm:$0xff] }
  0x1f   : > { %732 = vmatprep.mubr.msk.bf16.mxu0 %vm288_vm0, %v266_v10  ;;  %v270_v22 = vpack.c.bf16 %v261_v20, %v260_v19  ;;  %v263_v24 = vld [vmem:[%s1030_s11 + $0x78] sm:$0xff]  ;;  %v422_v26 = vld [vmem:[%s1061_s14 + $0x20] sm:$0xff]  ;;  %v423_v27 = vld [vmem:[%s1061_s14 + $0x28] sm:$0xff]  ;;  %s855_s11 = sshll.u32 %s931_s10, 4  ;;  %s856_s11 = int_to_ptr.vmem [resolvable:$false] %s855_s11 }
  0x20   : > { %v271_v25 = vpack.c.bf16 %v263_v24, %v262_v23  ;;  %v436_v28 = vpack.c.bf16 %v423_v27, %v422_v26  ;;  %v418_v29 = vld [vmem:[%s1061_s14] sm:$0xff]  ;;  %v419_v30 = vld [vmem:[%s1061_s14 + $0x8] sm:$0xff]  ;;  %v424_v56 = vld [vmem:[%s1061_s14 + $0x30] sm:$0xff]  ;;  %s857_s12 = scalar_lea.vmem %s856_s11, 4096  ;;  %p858_p1 = scmp.lt.s32.totalorder %s1107_s5, %s856_s11 }
  0x21   : > { %v434_v31 = vpack.c.bf16 %v419_v30, %v418_v29  ;;  %v425_v57 = vld [vmem:[%s1061_s14 + $0x38] sm:$0xff]  ;;  %v420_v58 = vld [vmem:[%s1061_s14 + $0x10] sm:$0xff]  ;;  %v426_v60 = vld [vmem:[%s1061_s14 + $0x40] sm:$0xff]  ;;  %p859_p2 = scmp.lt.s32.totalorder %s857_s12, %s851_s9 }
  0x22   : > { %764 = vmatprep.mubr.bf16.mxu1 %v436_v28  ;;  %v421_v59 = vld [vmem:[%s1061_s14 + $0x18] sm:$0xff]  ;;  %v427_v61 = vld [vmem:[%s1061_s14 + $0x48] sm:$0xff]  ;;  %v437_v62 = vpack.c.bf16 %v425_v57, %v424_v56  ;;  %v428_v1 = vld [vmem:[%s1061_s14 + $0x50] sm:$0xff] }
  0x23   : > { %v435_v63 = vpack.c.bf16 %v421_v59, %v420_v58  ;;  %v438_v0 = vpack.c.bf16 %v427_v61, %v426_v60  ;;  %v429_v2 = vld [vmem:[%s1061_s14 + $0x58] sm:$0xff]  ;;  %v430_v3 = vld [vmem:[%s1061_s14 + $0x60] sm:$0xff]  ;;  %v431_v4 = vld [vmem:[%s1061_s14 + $0x68] sm:$0xff]  ;;  %p860_p3 = por %p859_p2, %p858_p1 }
  0x24   : > { %v439_v5 = vpack.c.bf16 %v429_v2, %v428_v1  ;;  %v440_v6 = vpack.c.bf16 %v431_v4, %v430_v3  ;;  %v432_v7 = vld [vmem:[%s1061_s14 + $0x70] sm:$0xff]  ;;  %v433_v8 = vld [vmem:[%s1061_s14 + $0x78] sm:$0xff]  ;;  %v689_v10 = vld [vmem:[%s1163_s3] ss:$0 sm:$0xff] }
  0x25   : > { %v441_v9 = vpack.c.bf16 %v433_v8, %v432_v7  ;;  %p861_p5 = pnand %p860_p3, %p854_p0 }
  0x26   : > { %733 = vmatmul.mubr.msk.bf16.gmra.mrb[4].mxu0 %vm288_vm0, %v267_v15 }
  0x27   : > { %736 = vmatprep.mubr.msk.bf16.mxu0 %vm288_vm0, %v268_v16 }
  0x2e   : > { %737 = vmatmul.mubr.msk.bf16.gmra.mrb[8].mxu0 %vm288_vm0, %v269_v21 }
  0x2f   : > { %740 = vmatprep.mubr.msk.bf16.mxu0 %vm288_vm0, %v270_v22 }
  0x36   : > { %741 = vmatmul.mubr.msk.bf16.gmra.mrb[12].mxu0 %vm288_vm0, %v271_v25 }
  0x37   : > { %760 = vmatprep.mubr.bf16.mxu0 %v434_v31 }
  0xf1   : > { %v730_v32 = vpop.f32.mrb[0].mxu0 }
  0xf2   : > { %v347_v33 = vpop.f32.mrb[1].mxu0 }
  0xf3   : > { %v731_v34 = vpop.f32.mrb[2].mxu0 }
  0xf4   : > { %v411_v35 = vpack.c.bf16 %v731_v34, %v730_v32  ;;  %v350_v36 = vpop.f32.mrb[3].mxu0 }
  0xf5   : > { %v410_v37 = vpack.c.bf16 %v350_v36, %v347_v33 }
  0xf7   : > { %744 = vmatprep.subr.bf16.mxu0 %v410_v37  ;;  %776 = vmatprep.subr.bf16.mxu1 %v410_v37 }
  0xf8   : > { %745 = vmatpush3.bf16.msra.mxu0 %v410_v37  ;;  %784 = vmatpush3.bf16.msra.mxu1 %v410_v37 }
  0xf9   : > { %v734_v38 = vpop.f32.mrb[4].mxu0  ;;  %746 = vmatprep.subr.bf16.mxu0 %v411_v35  ;;  %777 = vmatprep.subr.bf16.mxu1 %v411_v35 }
  0xfa   : > { %v363_v39 = vpop.f32.mrb[5].mxu0 }
  0xfb   : > { %v735_v40 = vpop.f32.mrb[6].mxu0 }
  0xfc   : > { %v413_v41 = vpack.c.bf16 %v735_v40, %v734_v38  ;;  %v366_v42 = vpop.f32.mrb[7].mxu0  ;;  %747 = vmatpush3.bf16.msra.mxu0 %v411_v35  ;;  %785 = vmatpush3.bf16.msra.mxu1 %v411_v35 }
  0xfd   : > { %v412_v43 = vpack.c.bf16 %v366_v42, %v363_v39 }
  0xff   : > { %748 = vmatprep.subr.bf16.mxu0 %v412_v43  ;;  %778 = vmatprep.subr.bf16.mxu1 %v412_v43 }
 0x100   : > { %749 = vmatpush3.bf16.msra.mxu0 %v412_v43  ;;  %786 = vmatpush3.bf16.msra.mxu1 %v412_v43 }
 0x101   : > { %v738_v44 = vpop.f32.mrb[8].mxu0  ;;  %750 = vmatprep.subr.bf16.mxu0 %v413_v41  ;;  %779 = vmatprep.subr.bf16.mxu1 %v413_v41 }
 0x102   : > { %v379_v45 = vpop.f32.mrb[9].mxu0 }
 0x103   : > { %v739_v46 = vpop.f32.mrb[10].mxu0 }
 0x104   : > { %v415_v47 = vpack.c.bf16 %v739_v46, %v738_v44  ;;  %v382_v48 = vpop.f32.mrb[11].mxu0  ;;  %751 = vmatpush3.bf16.msra.mxu0 %v413_v41  ;;  %787 = vmatpush3.bf16.msra.mxu1 %v413_v41 }
 0x105   : > { %v414_v49 = vpack.c.bf16 %v382_v48, %v379_v45 }
 0x107   : > { %752 = vmatprep.subr.bf16.mxu0 %v414_v49  ;;  %780 = vmatprep.subr.bf16.mxu1 %v414_v49 }
 0x108   : > { %753 = vmatpush3.bf16.msra.mxu0 %v414_v49  ;;  %788 = vmatpush3.bf16.msra.mxu1 %v414_v49 }
 0x109   : > { %v742_v50 = vpop.f32.mrb[12].mxu0  ;;  %754 = vmatprep.subr.bf16.mxu0 %v415_v47  ;;  %781 = vmatprep.subr.bf16.mxu1 %v415_v47 }
 0x10a   : > { %v395_v51 = vpop.f32.mrb[13].mxu0 }
 0x10b   : > { %v743_v52 = vpop.f32.mrb[14].mxu0 }
 0x10c   : > { %v417_v53 = vpack.c.bf16 %v743_v52, %v742_v50  ;;  %v398_v54 = vpop.f32.mrb[15].mxu0  ;;  %755 = vmatpush3.bf16.msra.mxu0 %v415_v47  ;;  %789 = vmatpush3.bf16.msra.mxu1 %v415_v47 }
 0x10d   : > { %v416_v55 = vpack.c.bf16 %v398_v54, %v395_v51 }
 0x10f   : > { %756 = vmatprep.subr.bf16.mxu0 %v416_v55  ;;  %782 = vmatprep.subr.bf16.mxu1 %v416_v55 }
 0x110   : > { %757 = vmatpush3.bf16.msra.mxu0 %v416_v55  ;;  %790 = vmatpush3.bf16.msra.mxu1 %v416_v55 }
 0x111   : > { %758 = vmatprep.subr.bf16.mxu0 %v417_v53  ;;  %783 = vmatprep.subr.bf16.mxu1 %v417_v53 }
 0x114   : > { %759 = vmatpush3.bf16.msra.mxu0 %v417_v53  ;;  %791 = vmatpush3.bf16.msra.mxu1 %v417_v53 }
 0x117   : > { %765 = vmatmul.mubr.bf16.vlgmr.msra.gmra.mrb[0].mxu1 %v437_v62  ;;  %761 = vmatmul.mubr.bf16.vlgmr.msra.gmra.mrb[16].mxu0 %v435_v63 }
 0x118   : > { %768 = vmatprep.mubr.bf16.mxu1 %v438_v0 }
 0x11f   : > { %769 = vmatmul.mubr.bf16.gmra.mrb[4].mxu1 %v439_v5 }
 0x120   : > { %772 = vmatprep.mubr.bf16.mxu1 %v440_v6 }
 0x127   : > { %773 = vmatmul.mubr.bf16.gmra.mrb[8].mxu1 %v441_v9 }
 0x1ea   : > { %v766_v11 = vpop.f32.mrb[0].mxu1  ;;  %v762_v12 = vpop.f32.mrb[16].mxu0 }
 0x1eb   : > { %v508_v13 = vadd.f32 %v766_v11, %v689_v10  ;;  %v499_v14 = vpop.f32.mrb[1].mxu1  ;;  %v492_v15 = vadd.f32 %v762_v12, %v689_v10  ;;  %v483_v16 = vpop.f32.mrb[17].mxu0 }
 0x1ec   : > { %v500_v17 = vadd.f32 %v689_v10, %v499_v14  ;;  %v767_v18 = vpop.f32.mrb[2].mxu1  ;;  %v484_v19 = vadd.f32 %v689_v10, %v483_v16  ;;  %v763_v20 = vpop.f32.mrb[18].mxu0 }
 0x1ed   : > { %552 = vst [vmem:[%s1085_s29 + $0x30] sm:$0xff] %v508_v13  ;;  %v511_v21 = vadd.f32 %v767_v18, %v689_v10  ;;  %v502_v22 = vpop.f32.mrb[3].mxu1  ;;  %548 = vst [vmem:[%s1085_s29 + $0x10] sm:$0xff] %v492_v15  ;;  %v495_v23 = vadd.f32 %v763_v20, %v689_v10  ;;  %v486_v24 = vpop.f32.mrb[19].mxu0 }
 0x1ee   : > { %550 = vst [vmem:[%s1085_s29 + $0x20] sm:$0xff] %v500_v17  ;;  %v503_v25 = vadd.f32 %v689_v10, %v502_v22  ;;  %546 = vst [vmem:[%s1085_s29] sm:$0xff] %v484_v19  ;;  %v487_v26 = vadd.f32 %v689_v10, %v486_v24 }
 0x1ef   : > { %553 = vst [vmem:[%s1085_s29 + $0x38] sm:$0xff] %v511_v21  ;;  %549 = vst [vmem:[%s1085_s29 + $0x18] sm:$0xff] %v495_v23 }
 0x1f0   : > { %551 = vst [vmem:[%s1085_s29 + $0x28] sm:$0xff] %v503_v25  ;;  %547 = vst [vmem:[%s1085_s29 + $0x8] sm:$0xff] %v487_v26 }
 0x1f2   : > { %v770_v27 = vpop.f32.mrb[4].mxu1 }
 0x1f3   : > { %v524_v28 = vadd.f32 %v770_v27, %v689_v10  ;;  %v515_v29 = vpop.f32.mrb[5].mxu1 }
 0x1f4   : > { %v516_v30 = vadd.f32 %v689_v10, %v515_v29  ;;  %v771_v31 = vpop.f32.mrb[6].mxu1 }
 0x1f5   : > { %556 = vst [vmem:[%s1085_s29 + $0x50] sm:$0xff] %v524_v28  ;;  %v527_v32 = vadd.f32 %v771_v31, %v689_v10  ;;  %v518_v33 = vpop.f32.mrb[7].mxu1 }
 0x1f6   : > { %554 = vst [vmem:[%s1085_s29 + $0x40] sm:$0xff] %v516_v30  ;;  %v519_v34 = vadd.f32 %v689_v10, %v518_v33 }
 0x1f7   : > { %557 = vst [vmem:[%s1085_s29 + $0x58] sm:$0xff] %v527_v32 }
 0x1f8   : > { %555 = vst [vmem:[%s1085_s29 + $0x48] sm:$0xff] %v519_v34 }
 0x1fa   : > { %v774_v35 = vpop.f32.mrb[8].mxu1 }
 0x1fb   : > { %v540_v36 = vadd.f32 %v774_v35, %v689_v10  ;;  %v531_v37 = vpop.f32.mrb[9].mxu1 }
 0x1fc   : > { %v532_v38 = vadd.f32 %v689_v10, %v531_v37  ;;  %v775_v39 = vpop.f32.mrb[10].mxu1 }
 0x1fd   : > { %560 = vst [vmem:[%s1085_s29 + $0x70] sm:$0xff] %v540_v36  ;;  %v543_v40 = vadd.f32 %v775_v39, %v689_v10  ;;  %v534_v41 = vpop.f32.mrb[11].mxu1 }
 0x1fe   : > { %558 = vst [vmem:[%s1085_s29 + $0x60] sm:$0xff] %v532_v38  ;;  %v535_v42 = vadd.f32 %v689_v10, %v534_v41 }
 0x1ff   : > { %561 = vst [vmem:[%s1085_s29 + $0x78] sm:$0xff] %v543_v40 }
 0x200   : > { %559 = vst [vmem:[%s1085_s29 + $0x68] sm:$0xff] %v535_v42 }
 0x201   : > { %864 = shalt.err (!%p861_p5)
}
 0x202   : > { %s865_s13 = scalar_lea.hbm %s1105_s8, 2048  ;;  %s869_s22 = scalar_lea.hbm %s1164_s4, 4096 }
 0x203   : > { %p866_p6 = scmp.ne.s32.totalorder %s1105_s8, %s865_s13  ;;  %p870_p10 = scmp.lt.u32.totalorder %s1105_s8, %s1164_s4 }
 0x204   : > { %p871_p11 = scmp.lt.u32.totalorder %s869_s22, %s865_s13  ;;  %p873_p13 = scmp.lt.u32.totalorder %s865_s13, %s1105_s8 }
 0x205   : > { %p867_p7 = pnand %p866_p6, %p999_p4 }
 0x206   : > { %p872_p12 = por %p871_p11, %p870_p10 }
 0x207   : > { %p868_p9 = pneg %p867_p7 }
 0x208   : > { %p874_p0 = por %p873_p13, %p872_p12 }
 0x20a   : > { %p875_p1 = pnand %p874_p0, %p868_p9 }
 0x20c   : > { %878 = shalt.err (!%p875_p1)
}
 0x20d   : > { %s932_s29 = smov 128   ;;  %s933_s30 = smov 8  }
 0x20e   : > { %792 = dma.vmem_to_hbm [thread:$0]  (%p999_p4), %s1107_s5, 2048, %s1105_s8, %s1114_s18, %s932_s29, %s932_s29, %s933_s30  }
 0x20f PF: > { %p798_p2 = scmp.ge.s32.totalorder %s929_s20, 2  ;;  %s593_s6 = sand.u32 1, %s909_s15  }
 0x210   : > { %s594_s7 = scalar_lea.sflag [#allocation3], %s593_s6 }
 0x211   : > { %p795_p3 = pnand %p798_p2, %p1006_p8 }
 0x213   : > { %904 = dma.done.wait (!%p795_p3), %s594_s7, 2048  }
 0x214   : > { %906 = vsyncadd (!%p795_p3), %s594_s7, 4294965248  ;;  %s17_s20 = sadd.s32 1, %s929_s20   ;;  %s1167_s15 = smov %s913_s16 }
 0x215   : > { %p14_p5 = scmp.ge.s32.totalorder %s17_s20, 4   ;;  %s1168_s16 = smov %s917_s17 }
 0x216   : > { %s1169_s17 = smov %s1012_s28  ;;  %s1170_s18 = smov %s925_s19 }
 0x217   : > { %s1171_s19 = smov %s1173_s23  ;;  %16 = sbr.rel (!%p14_p5) target bundleno = 4 (0x4), region = 74 }
 0x21e   :  { %599 = vsyncpa [#allocation3], 1 }
 0x21f   :  { %601 = vsyncpa [#allocation3 + $0x1], 1 }

</bundles_post_ra>
